<compile_context>
chip_gen: v5e
topology: v5e:2x2
jax: 0.10.0
libtpu: 0.0.40
codegen_flags: <defaults>
</compile_context>

<pallas_src>
import numpy as np
import jax
import jax.numpy as jnp
from jax.experimental import pallas as pl
from jax.experimental.pallas import tpu as pltpu

_LANES = 128
_MAX_TILE_SUBLANES = 4096   # 4096 x 128 x 4 B = 2 MiB per f32 buffer


def _mixup_kernel(lam_ref, x_ref, o_ref, prev_ref):
    """Carry-pattern batch mixup.

    Grid = (num_feature_tiles, B + 1); the inner axis `bp` walks the batch
    sequentially.  At step bp the input block is x[(bp - 1) % B, f_tile]; the
    scratch `prev_ref` holds the previous step's input block, i.e. the rolled
    row x[(b - 1) % B] for b = bp - 1.
    """
    bp = pl.program_id(1)

    @pl.when(bp > 0)
    def _():
        b = bp - 1
        lam = lam_ref[b]                              # float32 scalar from SMEM
        x = x_ref[...].astype(jnp.float32)            # x[b]
        prev = prev_ref[...].astype(jnp.float32)      # x[(b - 1) % B]
        # lam * x + (1 - lam) * prev  ==  prev + lam * (x - prev)  (one fewer vmul)
        o_ref[...] = (prev + lam * (x - prev)).astype(o_ref.dtype)

    # Carry this step's input row for the next batch step (also primes the
    # wrap row x[B-1] at bp == 0 of every feature tile).
    prev_ref[...] = x_ref[...]


def _mixup_small_jnp(x, lam_f32):
    """Fused roll + lerp for lane-sparse tensors (feature size < 128)."""
    B = x.shape[0]
    lam_b = lam_f32.reshape((B,) + (1,) * (x.ndim - 1))
    prev = jnp.roll(x, 1, axis=0).astype(jnp.float32)
    xf = x.astype(jnp.float32)
    return (prev + lam_b * (xf - prev)).astype(x.dtype)


def batch_mixup(x: jax.Array, lam: jax.Array) -> jax.Array:
    """lam * x + (1 - lam) * roll(x, 1, axis=0), lam broadcast per batch element."""
    B = x.shape[0]
    orig_shape = x.shape
    F = int(np.prod(orig_shape[1:])) if x.ndim > 1 else 1
    lam_f32 = jnp.asarray(lam, dtype=jnp.float32).reshape(B)

    # Lane-sparse inputs (labels, tiny tensors): a Pallas grid of B steps would
    # be ~100% fixed overhead + masked vst; XLA fuses roll+lerp in one pass.
    if F < _LANES:
        return _mixup_small_jnp(x, lam_f32)

    # Lane-dense layout: (B, S, 128) with the feature axis on lanes.
    S = pl.cdiv(F, _LANES)
    if S <= _MAX_TILE_SUBLANES:
        tile_s, s_pad = S, S                    # full-feature block, no sublane pad
    else:
        tile_s = _MAX_TILE_SUBLANES
        s_pad = pl.cdiv(S, tile_s) * tile_s
    f_pad = s_pad * _LANES

    xf = x.reshape(B, F)
    if f_pad != F:
        xf = jnp.pad(xf, ((0, 0), (0, f_pad - F)))
    x3 = xf.reshape(B, s_pad, _LANES)
    num_f_tiles = s_pad // tile_s

    out = pl.pallas_call(
        _mixup_kernel,
        out_shape=jax.ShapeDtypeStruct((B, s_pad, _LANES), x.dtype),
        grid_spec=pltpu.PrefetchScalarGridSpec(
            num_scalar_prefetch=1,                       # lam lives in SMEM
            grid=(num_f_tiles, B + 1),                   # carried batch axis last
            in_specs=[
                # x[(bp - 1) % B, f_tile]
                pl.BlockSpec((1, tile_s, _LANES),
                             lambda f, bp, lam: ((bp + B - 1) % B, f, 0)),
            ],
            # out[bp - 1, f_tile]; at bp == 0 alias block 0 (overwritten at bp == 1
            # before any writeback, since the block index does not change).
            out_specs=pl.BlockSpec((1, tile_s, _LANES),
                                   lambda f, bp, lam: (jnp.maximum(bp - 1, 0), f, 0)),
            scratch_shapes=[pltpu.VMEM((1, tile_s, _LANES), x.dtype)],
        ),
        compiler_params=pltpu.CompilerParams(
            dimension_semantics=("parallel", "arbitrary"),
            vmem_limit_bytes=32 * 1024 * 1024,
        ),
    )(lam_f32, x3)

    out = out.reshape(B, f_pad)
    if f_pad != F:
        out = out[:, :F]
    return out.reshape(orig_shape)


class BatchMixUp:
    """JAX/Pallas port of torchaug.batch_transforms.BatchMixUp (forward pass)."""

    def __init__(self, alpha: float, inplace: bool = False):
        self.alpha = float(alpha)
        # TODO(synk): functional JAX never mutates inputs; `inplace` is a no-op.
        self.inplace = inplace

    def _get_params(self, key, batch_size: int) -> jax.Array:
        # Beta(alpha, alpha).sample((B,)) with concentration shape [1] -> (B, 1)
        return jax.random.beta(
            key, self.alpha, self.alpha, shape=(batch_size, 1), dtype=jnp.float32
        )

    def __call__(self, key, tensor, labels=None):
        lam = self._get_params(key, tensor.shape[0])
        mixed = batch_mixup(tensor, lam)
        if labels is None:
            return mixed, None, lam
        # Labels (num_classes << 128) go through the fused jnp path inside
        # batch_mixup — a dedicated Pallas launch there is pure overhead.
        return mixed, batch_mixup(labels, lam), lam


def _reference_mixup(x, lam):
    lam_b = lam.reshape((x.shape[0],) + (1,) * (x.ndim - 1)).astype(jnp.float32)
    return (lam_b * x.astype(jnp.float32)
            + (1.0 - lam_b) * jnp.roll(x, 1, axis=0).astype(jnp.float32)).astype(x.dtype)


if __name__ == "__main__":
    key = jax.random.PRNGKey(0)
    k_x, k_lbl, k_lam = jax.random.split(key, 3)

    B, C, H, W = 2, 4, 16, 16
    NUM_CLASSES = 8

    x = jax.random.normal(k_x, (B, C, H, W), dtype=jnp.float32)
    labels = jax.nn.one_hot(
        jax.random.randint(k_lbl, (B,), 0, NUM_CLASSES), NUM_CLASSES
    ).astype(jnp.float32)

    mod = BatchMixUp(alpha=0.5, inplace=False)
    mixed_x, mixed_labels, lam = mod(k_lam, x, labels)

    jax.block_until_ready((mixed_x, mixed_labels, lam))

    # correctness check against plain-JAX reference
    np.testing.assert_allclose(
        np.asarray(mixed_x), np.asarray(_reference_mixup(x, lam)),
        rtol=1e-5, atol=1e-5,
    )
    np.testing.assert_allclose(
        np.asarray(mixed_labels), np.asarray(_reference_mixup(labels, lam)),
        rtol=1e-5, atol=1e-5,
    )
    assert lam.shape == (B, 1) and lam.dtype == jnp.float32
    assert mixed_x.shape == (B, C, H, W) and mixed_x.dtype == x.dtype
    assert mixed_labels.shape == (B, NUM_CLASSES)

    print("KERNEL_OK")
</pallas_src>

<mosaic_0001>
module attributes {stable_mosaic.version = 11 : i64} {
  func.func @_mixup_kernel(%arg0: i32, %arg1: i32, %arg2: memref<2xf32, #tpu.memory_space<smem>>, %arg3: memref<1x8x128xf32, #tpu.memory_space<vmem>>, %arg4: memref<1x8x128xf32, #tpu.memory_space<vmem>>, %arg5: memref<1x8x128xf32, #tpu.memory_space<vmem>>) attributes {dimension_semantics = [#tpu.dimension_semantics<parallel>, #tpu.dimension_semantics<arbitrary>], iteration_bounds = array<i64: 1, 3>, scalar_prefetch = 1 : i64, scratch_operands = 1 : i64, tpu.core_type = #tpu.core_type<tc>, window_params = [{transform_indices = @transform_0, window_bounds = array<i64: 1, 8, 128>}, {transform_indices = @transform_1, window_bounds = array<i64: 1, 8, 128>}]} {
    %c0_i32 = arith.constant 0 : i32
    %0 = arith.cmpi sgt, %arg1, %c0_i32 : i32
    %1 = arith.extui %0 : i1 to i32
    %c0_i32_0 = arith.constant 0 : i32
    %2 = arith.cmpi ne, %1, %c0_i32_0 : i32
    scf.if %2 {
      %c1_i32 = arith.constant 1 : i32
      %5 = arith.subi %arg1, %c1_i32 : i32
      %6 = arith.index_cast %5 : i32 to index
      %7 = memref.load %arg2[%6] : memref<2xf32, #tpu.memory_space<smem>>
      %c0_6 = arith.constant 0 : index
      %c0_7 = arith.constant 0 : index
      %c0_8 = arith.constant 0 : index
      %8 = vector.load %arg3[%c0_6, %c0_7, %c0_8] : memref<1x8x128xf32, #tpu.memory_space<vmem>>, vector<1x8x128xf32>
      %c0_9 = arith.constant 0 : index
      %c0_10 = arith.constant 0 : index
      %c0_11 = arith.constant 0 : index
      %9 = vector.load %arg5[%c0_9, %c0_10, %c0_11] : memref<1x8x128xf32, #tpu.memory_space<vmem>>, vector<1x8x128xf32>
      %10 = arith.subf %8, %9 : vector<1x8x128xf32>
      %11 = vector.broadcast %7 : f32 to vector<1x8x128xf32>
      %12 = arith.mulf %11, %10 : vector<1x8x128xf32>
      %13 = arith.addf %9, %12 : vector<1x8x128xf32>
      %c0_12 = arith.constant 0 : index
      %c0_13 = arith.constant 0 : index
      %c0_14 = arith.constant 0 : index
      %14 = vector.load %arg4[%c0_12, %c0_13, %c0_14] : memref<1x8x128xf32, #tpu.memory_space<vmem>>, vector<1x8x128xf32>
      tpu.vector_store %arg4[%c0_12, %c0_13, %c0_14], %13 {strides = array<i32>} : memref<1x8x128xf32, #tpu.memory_space<vmem>>, vector<1x8x128xf32>,
    } else {
    }
    %c0 = arith.constant 0 : index
    %c0_1 = arith.constant 0 : index
    %c0_2 = arith.constant 0 : index
    %3 = vector.load %arg3[%c0, %c0_1, %c0_2] : memref<1x8x128xf32, #tpu.memory_space<vmem>>, vector<1x8x128xf32>
    %c0_3 = arith.constant 0 : index
    %c0_4 = arith.constant 0 : index
    %c0_5 = arith.constant 0 : index
    %4 = vector.load %arg5[%c0_3, %c0_4, %c0_5] : memref<1x8x128xf32, #tpu.memory_space<vmem>>, vector<1x8x128xf32>
    tpu.vector_store %arg5[%c0_3, %c0_4, %c0_5], %3 {strides = array<i32>} : memref<1x8x128xf32, #tpu.memory_space<vmem>>, vector<1x8x128xf32>,
    return
  }
  func.func @transform_0(%arg0: i32, %arg1: i32, %arg2: memref<2xf32, #tpu.memory_space<smem>>) -> (i32, i32, i32) {
    %c2_i32 = arith.constant 2 : i32
    %0 = arith.addi %arg1, %c2_i32 : i32
    %c1_i32 = arith.constant 1 : i32
    %1 = arith.subi %0, %c1_i32 : i32
    %c2_i32_0 = arith.constant 2 : i32
    %c0_i32 = arith.constant 0 : i32
    %2 = arith.cmpi eq, %c2_i32_0, %c0_i32 : i32
    %c1_i32_1 = arith.constant 1 : i32
    %3 = arith.select %2, %c1_i32_1, %c2_i32_0 : i32
    %4 = arith.remsi %1, %3 : i32
    %c0_i32_2 = arith.constant 0 : i32
    %5 = arith.cmpi ne, %4, %c0_i32_2 : i32
    %c0_i32_3 = arith.constant 0 : i32
    %6 = arith.cmpi slt, %4, %c0_i32_3 : i32
    %c0_i32_4 = arith.constant 0 : i32
    %7 = arith.cmpi slt, %3, %c0_i32_4 : i32
    %8 = arith.xori %6, %7 : i1
    %9 = arith.andi %8, %5 : i1
    %10 = arith.addi %4, %3 : i32
    %11 = arith.select %9, %10, %4 : i32
    %c0_i32_5 = arith.constant 0 : i32
    %c0_i32_6 = arith.constant 0 : i32
    return %11, %arg0, %c0_i32_5 : i32, i32, i32
  }
  func.func @transform_1(%arg0: i32, %arg1: i32, %arg2: memref<2xf32, #tpu.memory_space<smem>>) -> (i32, i32, i32) {
    %c1_i32 = arith.constant 1 : i32
    %0 = arith.subi %arg1, %c1_i32 : i32
    %c0_i32 = arith.constant 0 : i32
    %1 = arith.maxsi %0, %c0_i32 : i32
    %c0_i32_0 = arith.constant 0 : i32
    %c0_i32_1 = arith.constant 0 : i32
    return %1, %arg0, %c0_i32_0 : i32, i32, i32
  }
}

</mosaic_0001>

<bundles_post_ra>
// kernel: tpu_custom_call.1
= control target key start
LH: loop header
LB: loop body
LE: loop exit
PB: predicated region body
PF: predicated region fallthrough
CT: control target
= control target key end

     0   :  { %s602_s12 = smov [#allocation4]   ;;  %s796_s0 = inlined_call_operand.hbm [shape: f32[2], index: 0, kind: input, shape index: {}]   ;;  %s797_s1 = inlined_call_operand.hbm [shape: f32[2,8,128], index: 1, kind: input, shape index: {}]   ;;  %s798_s2 = inlined_call_operand.hbm [shape: f32[2,8,128], index: 2, kind: output, shape index: {}]  }
   0x1   :  { %s8_s11 = sshll.u32 %s796_s0, 4  ;;  %s9_s11 = int_to_ptr.hbm [resolvable:$true] %s8_s11 }
   0x2   :  { %11 = dma.hbm_to_smem %s9_s11, 16, %s602_s12, [#allocation3] }
   0x3   :  { %556 = dma.done.wait [#allocation3], 16 }
   0x4   :  { %557 = vsyncadd [#allocation3], 4294967280 }
   0x5   :  { %14 = sfence }
   0x6   :  { %15 = vsyncpa [#allocation6], 0 }
   0x7   :  { %17 = vsyncpa [#allocation6 + $0x1], 0 }
   0x8   :  { %18 = vsyncpa [#allocation7], 0 }
   0x9   :  { %20 = vsyncpa [#allocation7 + $0x1], 0  ;;  %s621_s13 = smov 0   ;;  %s623_s14 = smov 0  }
   0xa   :  { %s625_s15 = smov 0   ;;  %s627_s16 = smov 0  }
   0xb   :  { %s629_s17 = smov 0   ;;  %s631_s0 = smov 0  }
   0xc   :  { %s633_s18 = smov 0   ;;  %s635_s19 = smov 0  }
   0xd   :  { %s637_s20 = smov 0  }
   0xe LB: > { %s336_s21 = sadd.s32 4294967295, %s600_s20   ;;  %s337_s22 = sadd.s32 4294967294, %s600_s20   ;;  %s600_s20 = sphi %s637_s20, %s26_s20   ;;  %s596_s19 = sphi %s635_s19, %s812_s19   ;;  %s592_s18 = sphi %s633_s18, %s811_s18   ;;  %s588_s0 = sphi %s631_s0, %s810_s0   ;;  %s584_s17 = sphi %s629_s17, %s809_s17   ;;  %s580_s16 = sphi %s627_s16, %s808_s16   ;;  %s576_s15 = sphi %s625_s15, %s807_s15   ;;  %s572_s14 = sphi %s623_s14, %s806_s14   ;;  %s568_s13 = sphi %s621_s13, %s805_s13  }
   0xf   : > { %s35_s23 = sadd.s32 1, %s596_s19  ;;  %s73_s24 = sadd.s32 1, %s588_s0 }
  0x10   : > { %p36_p0 = scmp.ge.s32.totalorder %s35_s23, 3  ;;  %s44_s25 = ssub.s32 0, %s35_s23 }
  0x11   : > { %p80_p1 = scmp.ne.s32.totalorder %s588_s0, %s584_s17  ;;  %s338_s27 = smin.u32 %s44_s25, %s35_s23 }
  0x12   : > { %s670_s26 = scalar_select %p36_p0, 0, %s35_s23  }
  0x13   : > { %p81_p2 = scmp.eq.s32.totalorder %s600_s20, 0  ;;  %s46_s28 = sand.u32 1, %s338_s27  }
  0x14   : > { %s55_s29 = sadd.s32 1, %s670_s26  ;;  %p340_p4 = scmp.lt.s32.totalorder %s46_s28, 0 }
  0x15   : > { %s57_s30 = ssub.s32 0, %s55_s29  ;;  %p674_p3 = por %p81_p2, %p80_p1 }
  0x16   : > { %s53_s4 = sadd.s32 2, %s46_s28  ;;  %s341_s5 = smin.u32 %s57_s30, %s55_s29 }
  0x17   : > { %p86_p5 = scmp.ne.s32.totalorder %s584_s17, %s580_s16  ;;  %s814_s4 = smov (!%p340_p4, %s53_s4), %s46_s28 }
  0x18   : > { %s59_s6 = sand.u32 1, %s341_s5   ;;  %p87_p6 = scmp.eq.s32.totalorder %s336_s21, 0 }
  0x19   : > { %s344_s7 = sadd.s32 4294967295, %s596_s19  ;;  %p343_p9 = scmp.lt.s32.totalorder %s59_s6, 0 }
  0x1a   : > { %p684_p7 = por %p87_p6, %p86_p5  ;;  %p97_p8 = scmp.gt.s32.totalorder %s344_s7, 0 }
  0x1b   : > { %s66_s9 = sadd.s32 2, %s59_s6  ;;  %s345_s10 = sadd.s32 4294967295, %s670_s26 }
  0x1c   : > { %s816_s7 = smov (!%p97_p8, %s344_s7), 0  ;;  %s818_s9 = smov (!%p343_p9, %s66_s9), %s59_s6 }
  0x1d   : > { %s107_s11 = sadd.s32 1, %s576_s15  ;;  %s68_s12 = ssub.s32 %s814_s4, %s818_s9 }
  0x1e   : > { %p100_p10 = scmp.gt.s32.totalorder %s345_s10, 0  ;;  %p71_p11 = scmp.eq.s32.totalorder %s68_s12, 0 }
  0x1f   : > { %p117_p12 = scmp.ne.s32.totalorder %s576_s15, %s572_s14  ;;  %p118_p13 = scmp.eq.s32.totalorder %s336_s21, 2 }
  0x20   : > { %s820_s10 = smov (!%p100_p10, %s345_s10), 0  ;;  %p123_p1 = scmp.ne.s32.totalorder %s572_s14, %s568_s13 }
  0x21   : > { %s696_s16 = scalar_select %p71_p11, %s588_s0, %s73_s24  }
  0x22   : > { %s102_s23 = ssub.s32 %s816_s7, %s820_s10  ;;  %p702_p2 = por %p118_p13, %p117_p12 }
  0x23   : > { %p105_p0 = scmp.eq.s32.totalorder %s102_s23, 0  ;;  %p124_p4 = scmp.eq.s32.totalorder %s337_s22, 2 }
  0x24   : > { %p375_p6 = scmp.lt.s32.totalorder %s600_s20, 3  ;;  %s144_s24 = sand.u32 1, %s588_s0  }
  0x25   : > { %s709_s27 = scalar_select %p105_p0, %s576_s15, %s107_s11  }
  0x26   : > { %p711_p5 = por %p124_p4, %p123_p1  ;;  %s348_s21 = sshll.u32 %s144_s24, 3 }
  0x27   : > { %s352_s29 = sshll.u32 %s814_s4, 3  ;;  %s148_s7 = scalar_lea.vmem [#allocation5], %s348_s21 }
  0x28   : > { %s166_s6 = scalar_lea.hbm %s797_s1, %s352_s29  ;;  %s170_s9 = sshll.u32 %s148_s7, 4  ;;  %s171_s9 = int_to_ptr.vmem [resolvable:$true] %s170_s9 }
  0x29   : > { %s168_s10 = sshll.u32 %s166_s6, 4  ;;  %p723_p8 = pnand %p375_p6, %p674_p3  ;;  %s169_s10 = int_to_ptr.hbm [resolvable:$true] %s168_s10 }
  0x2a   : > { %p353_p9 = scmp.ge.s32.totalorder %s600_s20, 1  ;;  %p175_p10 = scmp.lt.s32.totalorder %s600_s20, 4 }
  0x2b   : > { %s145_s11 = scalar_lea.sflag [#allocation6], %s144_s24  ;;  %s462_s12 = sshra.s32 %s169_s10, 4  ;;  %s463_s12 = int_to_ptr.hbm [resolvable:$true] %s462_s12 }
  0x2c   : > { %s464_s4 = scalar_lea.hbm %s463_s12, 8  ;;  %p466_p12 = pneg %p723_p8 }
  0x2d   : > { %p465_p11 = scmp.ne.s32.totalorder %s463_s12, %s464_s4  ;;  %s469_s3 = scalar_lea.hbm %s797_s1, 16 }
  0x2e   : > { %p470_p3 = scmp.lt.s32.totalorder %s463_s12, %s797_s1  ;;  %p471_p1 = scmp.lt.s32.totalorder %s469_s3, %s464_s4 }
  0x2f   : > { %p467_p13 = pnand %p466_p12, %p465_p11 }
  0x30   : > { %p472_p4 = por %p471_p1, %p470_p3 }
  0x31   : > { %p468_p0 = pneg %p467_p13 }
  0x33   : > { %p473_p6 = pnand %p472_p4, %p468_p0 }
  0x35   : > { %476 = shalt.err (!%p473_p6)
}
  0x36   : > { %370 = dma.hbm_to_vmem [thread:$0]  (!%p723_p8), %s169_s10, 128, %s171_s9, %s145_s11  }
  0x37   : > { %p176_p11 = pnand %p353_p9, %p175_p10 }
  0x38   : > { %s181_s24 = sand.u32 (!%p176_p11), 1, %s584_s17  }
  0x39   : > { %179 = sbr.rel (%p176_p11) target bundleno = 97 (0x61), region = 24  ;;  %s354_s5 = sshll.u32 (!%p176_p11), %s181_s24, 3 }
  0x3a   : > { %s182_s6 = scalar_lea.sflag (!%p176_p11), [#allocation6], %s181_s24  ;;  %s185_s7 = scalar_lea.vmem (!%p176_p11), [#allocation5], %s354_s5 }
  0x3e   : > { %559 = dma.done.wait (%p684_p7), %s182_s6, 128  }
  0x3f   : > { %561 = vsyncadd (%p684_p7), %s182_s6, 4294967168  ;;  %s202_s22 = sand.u32 1, %s572_s14   ;;  %p356_p8 = scmp.le.s32.totalorder %s592_s18, 0 }
  0x40   : > { %s355_s12 = sshll.u32 %s202_s22, 3  ;;  %s357_s9 = sadd.s32 (!%p356_p8), 4294967295, %s592_s18 }
  0x41   : > { %s204_s4 = scalar_lea.vmem [#allocation8], %s355_s12  ;;  %224 = sbr.rel (%p356_p8) target bundleno = 78 (0x4e), region = 32 }
  0x42   : > { %s226_s10 = sld [smem:[#allocation4 + %s357_s9]] (!%p356_p8) }
  0x46   : > { %v227_v0 = vld [vmem:[%s185_s7] sm:$0xff]  ;;  %v228_v1 = vld [vmem:[#allocation2] sm:$0xff] }
  0x47   : > { %v229_v2 = vsub.f32 %v227_v0, %v228_v1 }
  0x48   : > { %v230_v3 = vstv %s226_s10 }
  0x49   : > { %v231_v4 = vmul.f32 %v230_v3, %v229_v2 }
  0x4b   : > { %v232_v5 = vadd.f32 %v231_v4, %v228_v1 }
  0x4d   : > { %233 = vst [vmem:[%s204_s4] sm:$0xff] %v232_v5 }
  0x4e PF: > { %v234_v6 = vld [vmem:[%s185_s7] sm:$0xff]  ;;  %s359_s8 = sadd.s32 4294967295, %s592_s18  ;;  %s253_s11 = sshll.u32 %s204_s4, 4  ;;  %s254_s11 = int_to_ptr.vmem [resolvable:$true] %s253_s11 }
  0x4f   : > { %235 = vst [vmem:[#allocation2] sm:$0xff] %v234_v6  ;;  %p245_p7 = scmp.gt.s32.totalorder %s359_s8, 0  ;;  %s237_s24 = scalar_lea.sflag [#allocation7], %s202_s22 }
  0x50   : > { %s512_s12 = scalar_lea.hbm %s798_s2, 16 }
  0x51   : > { %s822_s8 = smov (!%p245_p7, %s359_s8), 0 }
  0x52   : > { %s360_s23 = sshll.u32 %s822_s8, 3 }
  0x53   : > { %s251_s29 = scalar_lea.hbm %s798_s2, %s360_s23 }
  0x54   : > { %s255_s30 = sshll.u32 %s251_s29, 4  ;;  %s256_s30 = int_to_ptr.hbm [resolvable:$true] %s255_s30 }
  0x55   : > { %s506_s5 = sshra.s32 %s256_s30, 4  ;;  %s507_s5 = int_to_ptr.hbm [resolvable:$true] %s506_s5 }
  0x56   : > { %s508_s6 = scalar_lea.hbm %s507_s5, 8  ;;  %p513_p13 = scmp.lt.s32.totalorder %s507_s5, %s798_s2 }
  0x57   : > { %p509_p9 = scmp.ne.s32.totalorder %s507_s5, %s508_s6  ;;  %p514_p0 = scmp.lt.s32.totalorder %s512_s12, %s508_s6 }
  0x59   : > { %p510_p10 = pnand %p509_p9, %p702_p2  ;;  %p515_p3 = por %p514_p0, %p513_p13 }
  0x5b   : > { %p511_p12 = pneg %p510_p10 }
  0x5d   : > { %p516_p1 = pnand %p515_p3, %p511_p12 }
  0x5f   : > { %519 = shalt.err (!%p516_p1)
}
  0x60   : > { %365 = dma.vmem_to_hbm [thread:$0]  (%p702_p2), %s254_s11, 128, %s256_s30, %s237_s24  }
  0x61 PF: > { %p376_p4 = scmp.ge.s32.totalorder %s600_s20, 2  ;;  %s267_s22 = sand.u32 1, %s568_s13  }
  0x62   : > { %s268_s10 = scalar_lea.sflag [#allocation7], %s267_s22 }
  0x63   : > { %p372_p6 = pnand %p376_p4, %p711_p5 }
  0x65   : > { %p373_p11 = pneg %p372_p6 }
  0x67   : > { %563 = dma.done.wait (%p373_p11), %s268_s10, 128  }
  0x68   : > { %565 = vsyncadd (%p373_p11), %s268_s10, 4294967168  ;;  %s26_s20 = sadd.s32 1, %s600_s20   ;;  %s804_s25 = smov %s696_s16 }
  0x69   : > { %p23_p8 = scmp.ge.s32.totalorder %s26_s20, 5   ;;  %s805_s13 = smov %s572_s14 }
  0x6a   : > { %s806_s14 = smov %s576_s15  ;;  %s807_s15 = smov %s709_s27 }
  0x6b   : > { %s808_s16 = smov %s584_s17  ;;  %s809_s17 = smov %s588_s0 }
  0x6c   : > { %s810_s0 = smov %s804_s25  ;;  %s811_s18 = smov %s596_s19 }
  0x6d   : > { %s812_s19 = smov %s670_s26  ;;  %25 = sbr.rel (!%p23_p8) target bundleno = 14 (0xe), region = 73 }
  0x72   :  { %274 = vsyncpa [#allocation6], 1 }
  0x73   :  { %276 = vsyncpa [#allocation6 + $0x1], 1 }
  0x74   :  { %277 = vsyncpa [#allocation7], 1 }
  0x75   :  { %279 = vsyncpa [#allocation7 + $0x1], 1 }

</bundles_post_ra>
